<compile_context>
chip_gen: v7x
topology: tpu7x:2x2x1
jax: 0.10.0
libtpu: 0.0.40
codegen_flags: <defaults>
</compile_context>

<pallas_src>
import jax
import jax.numpy as jnp
from jax.experimental import pallas as pl
from jax.experimental.pallas import tpu as pltpu


def _round_up(n, m):
    return ((n + m - 1) // m) * m


def _mlp_kernel(x_ref, w1_ref, b1_ref, w2_ref, b2_ref,
                w3_ref, b3_ref, w4_ref, b4_ref, o_ref):
    """Fused 4-layer MLP on one (TB, F) batch tile."""
    x = x_ref[...]                                                     # (TB, F) bf16
    h = jnp.dot(x, w1_ref[...], preferred_element_type=jnp.float32)    # MXU, f32 acc
    h = jnp.maximum(h + b1_ref[...], 0.0).astype(jnp.bfloat16)
    h = jnp.dot(h, w2_ref[...], preferred_element_type=jnp.float32)
    h = jnp.maximum(h + b2_ref[...], 0.0).astype(jnp.bfloat16)
    h = jnp.dot(h, w3_ref[...], preferred_element_type=jnp.float32)
    h = jnp.maximum(h + b3_ref[...], 0.0)                              # (TB, 32) f32
    # 32 -> 1 tail layer on the VPU (mul) + XLU (lane reduce): no 1-lane MXU pass.
    out = jnp.sum(h * w4_ref[...], axis=-1, keepdims=True) + b4_ref[...]   # (TB, 1)
    o_ref[...] = jnp.tanh(out).astype(o_ref.dtype)                     # tanh -> EUP


def board_evaluator_forward(x, params, *, block_rows=1024):
    """x: (B, rows, cols) float32 -> (B, 1) float32."""
    B = x.shape[0]
    x_flat = x.reshape(B, -1)          # nn.Flatten (row-major, same as torch)
    F = x_flat.shape[1]

    (w1, b1), (w2, b2), (w3, b3), (w4, b4) = params

    # bf16 activations/weights feed the MXU; biases (and the tail row) stay f32.
    x_bf = x_flat.astype(jnp.bfloat16)
    w1b = w1.astype(jnp.bfloat16)
    w2b = w2.astype(jnp.bfloat16)
    w3b = w3.astype(jnp.bfloat16)
    w4_row = w4.reshape(1, -1)         # (1, 32) f32, used on the VPU tail layer

    # Batch tile: multiple of 16 (bf16 sublane packing); pad the batch up to it.
    block_rows = max(16, _round_up(block_rows, 16))
    TB = block_rows if B >= block_rows else _round_up(B, 16)
    B_pad = _round_up(B, TB)
    if B_pad != B:
        x_bf = jnp.pad(x_bf, ((0, B_pad - B), (0, 0)))

    grid = (B_pad // TB,)

    def x_map(i):
        return (i, 0)

    def const_map(i):
        return (0, 0)

    in_specs = [
        pl.BlockSpec((TB, F), x_map),           # streamed + double-buffered
        pl.BlockSpec(w1b.shape, const_map),     # weights/biases: resident in VMEM
        pl.BlockSpec(b1.shape, const_map),
        pl.BlockSpec(w2b.shape, const_map),
        pl.BlockSpec(b2.shape, const_map),
        pl.BlockSpec(w3b.shape, const_map),
        pl.BlockSpec(b3.shape, const_map),
        pl.BlockSpec(w4_row.shape, const_map),
        pl.BlockSpec(b4.shape, const_map),
    ]
    out_spec = pl.BlockSpec((TB, 1), x_map)

    out = pl.pallas_call(
        _mlp_kernel,
        out_shape=jax.ShapeDtypeStruct((B_pad, 1), jnp.float32),
        grid=grid,
        in_specs=in_specs,
        out_specs=out_spec,
        compiler_params=pltpu.CompilerParams(
            dimension_semantics=("parallel",)),
    )(x_bf, w1b, b1, w2b, b2, w3b, b3, w4_row, b4)

    return out[:B]


def init_params(key, rows, cols):
    """Deterministic init mimicking PyTorch's default Linear init (U(-1/sqrt(fan_in), +))."""
    dims = [rows * cols, 128, 64, 32, 1]
    params = []
    for i in range(4):
        fan_in, fan_out = dims[i], dims[i + 1]
        key, kw, kb = jax.random.split(key, 3)
        bound = 1.0 / jnp.sqrt(jnp.float32(fan_in))
        w = jax.random.uniform(kw, (fan_in, fan_out), jnp.float32, -bound, bound)
        b = jax.random.uniform(kb, (1, fan_out), jnp.float32, -bound, bound)
        params.append((w, b))
    return params


def reference_forward(x, params):
    """Pure-JAX f32 reference for a sanity check."""
    h = x.reshape(x.shape[0], -1)
    (w1, b1), (w2, b2), (w3, b3), (w4, b4) = params
    h = jnp.maximum(h @ w1 + b1, 0.0)
    h = jnp.maximum(h @ w2 + b2, 0.0)
    h = jnp.maximum(h @ w3 + b3, 0.0)
    return jnp.tanh(h @ w4 + b4)


if __name__ == "__main__":
    rows, cols, batch = 6, 7, 64   # Connect-4 style board

    key = jax.random.PRNGKey(0)
    key, kx = jax.random.split(key)
    x = jax.random.uniform(kx, (batch, rows, cols), jnp.float32, -1.0, 1.0)
    params = init_params(key, rows, cols)

    # Small block_rows so the demo exercises a multi-step pipelined grid (grid=(4,)).
    out = board_evaluator_forward(x, params, block_rows=16)
    out = jax.block_until_ready(out)

    ref = reference_forward(x, params)
    assert out.shape == (batch, 1), out.shape
    # bf16 MXU inputs with f32 accumulation: compare loosely against the f32 reference.
    assert jnp.max(jnp.abs(out - ref)) < 2e-2, (out, ref)

    # Also exercise the default (single big tile) path with a batch that needs padding.
    batch2 = 100
    key, kx2 = jax.random.split(key)
    x2 = jax.random.uniform(kx2, (batch2, rows, cols), jnp.float32, -1.0, 1.0)
    out2 = jax.block_until_ready(board_evaluator_forward(x2, params))
    ref2 = reference_forward(x2, params)
    assert out2.shape == (batch2, 1), out2.shape
    assert jnp.max(jnp.abs(out2 - ref2)) < 2e-2

    print("KERNEL_OK")
</pallas_src>

<mosaic_0001>
module attributes {stable_mosaic.version = 11 : i64} {
  func.func @_mlp_kernel(%arg0: i32, %arg1: memref<16x42xbf16, #tpu.memory_space<vmem>>, %arg2: memref<42x128xbf16, #tpu.memory_space<vmem>>, %arg3: memref<1x128xf32, #tpu.memory_space<vmem>>, %arg4: memref<128x64xbf16, #tpu.memory_space<vmem>>, %arg5: memref<1x64xf32, #tpu.memory_space<vmem>>, %arg6: memref<64x32xbf16, #tpu.memory_space<vmem>>, %arg7: memref<1x32xf32, #tpu.memory_space<vmem>>, %arg8: memref<1x32xf32, #tpu.memory_space<vmem>>, %arg9: memref<1x1xf32, #tpu.memory_space<vmem>>, %arg10: memref<16x1xf32, #tpu.memory_space<vmem>>) attributes {dimension_semantics = [#tpu.dimension_semantics<parallel>], iteration_bounds = array<i64: 4>, scalar_prefetch = 0 : i64, scratch_operands = 0 : i64, tpu.core_type = #tpu.core_type<tc>, window_params = [{transform_indices = @transform_0, window_bounds = array<i64: 16, 42>}, {pipeline_mode = #tpu.pipeline_mode<synchronous>, transform_indices = @transform_1, window_bounds = array<i64: 42, 128>}, {pipeline_mode = #tpu.pipeline_mode<synchronous>, transform_indices = @transform_2, window_bounds = array<i64: 1, 128>}, {pipeline_mode = #tpu.pipeline_mode<synchronous>, transform_indices = @transform_3, window_bounds = array<i64: 128, 64>}, {pipeline_mode = #tpu.pipeline_mode<synchronous>, transform_indices = @transform_4, window_bounds = array<i64: 1, 64>}, {pipeline_mode = #tpu.pipeline_mode<synchronous>, transform_indices = @transform_5, window_bounds = array<i64: 64, 32>}, {pipeline_mode = #tpu.pipeline_mode<synchronous>, transform_indices = @transform_6, window_bounds = array<i64: 1, 32>}, {pipeline_mode = #tpu.pipeline_mode<synchronous>, transform_indices = @transform_7, window_bounds = array<i64: 1, 32>}, {pipeline_mode = #tpu.pipeline_mode<synchronous>, transform_indices = @transform_8, window_bounds = array<i64: 1, 1>}, {transform_indices = @transform_9, window_bounds = array<i64: 16, 1>}]} {
    %c0 = arith.constant 0 : index
    %c0_0 = arith.constant 0 : index
    %0 = vector.load %arg1[%c0, %c0_0] : memref<16x42xbf16, #tpu.memory_space<vmem>>, vector<16x42xbf16>
    %c0_1 = arith.constant 0 : index
    %c0_2 = arith.constant 0 : index
    %1 = vector.load %arg2[%c0_1, %c0_2] : memref<42x128xbf16, #tpu.memory_space<vmem>>, vector<42x128xbf16>
    %cst = arith.constant dense<0.000000e+00> : vector<16x128xf32>
    %2 = tpu.matmul %0, %1, %cst {dimension_numbers = #tpu.dot_dimension_numbers<[1], [0], [0], [1], [0, 0, 1, 1], [], []>} : vector<16x42xbf16>, vector<42x128xbf16>, vector<16x128xf32> -> vector<16x128xf32>
    %c0_3 = arith.constant 0 : index
    %c0_4 = arith.constant 0 : index
    %3 = vector.load %arg3[%c0_3, %c0_4] : memref<1x128xf32, #tpu.memory_space<vmem>>, vector<1x128xf32>
    %4 = vector.broadcast %3 : vector<1x128xf32> to vector<16x128xf32>
    %5 = arith.addf %2, %4 : vector<16x128xf32>
    %cst_5 = arith.constant 0.000000e+00 : f32
    %6 = vector.broadcast %cst_5 : f32 to vector<16x128xf32>
    %7 = arith.maximumf %5, %6 : vector<16x128xf32>
    %8 = arith.truncf %7 : vector<16x128xf32> to vector<16x128xbf16>
    %c0_6 = arith.constant 0 : index
    %c0_7 = arith.constant 0 : index
    %9 = vector.load %arg4[%c0_6, %c0_7] : memref<128x64xbf16, #tpu.memory_space<vmem>>, vector<128x64xbf16>
    %cst_8 = arith.constant dense<0.000000e+00> : vector<16x64xf32>
    %10 = tpu.matmul %8, %9, %cst_8 {dimension_numbers = #tpu.dot_dimension_numbers<[1], [0], [0], [1], [0, 0, 1, 1], [], []>} : vector<16x128xbf16>, vector<128x64xbf16>, vector<16x64xf32> -> vector<16x64xf32>
    %c0_9 = arith.constant 0 : index
    %c0_10 = arith.constant 0 : index
    %11 = vector.load %arg5[%c0_9, %c0_10] : memref<1x64xf32, #tpu.memory_space<vmem>>, vector<1x64xf32>
    %12 = vector.broadcast %11 : vector<1x64xf32> to vector<16x64xf32>
    %13 = arith.addf %10, %12 : vector<16x64xf32>
    %cst_11 = arith.constant 0.000000e+00 : f32
    %14 = vector.broadcast %cst_11 : f32 to vector<16x64xf32>
    %15 = arith.maximumf %13, %14 : vector<16x64xf32>
    %16 = arith.truncf %15 : vector<16x64xf32> to vector<16x64xbf16>
    %c0_12 = arith.constant 0 : index
    %c0_13 = arith.constant 0 : index
    %17 = vector.load %arg6[%c0_12, %c0_13] : memref<64x32xbf16, #tpu.memory_space<vmem>>, vector<64x32xbf16>
    %cst_14 = arith.constant dense<0.000000e+00> : vector<16x32xf32>
    %18 = tpu.matmul %16, %17, %cst_14 {dimension_numbers = #tpu.dot_dimension_numbers<[1], [0], [0], [1], [0, 0, 1, 1], [], []>} : vector<16x64xbf16>, vector<64x32xbf16>, vector<16x32xf32> -> vector<16x32xf32>
    %c0_15 = arith.constant 0 : index
    %c0_16 = arith.constant 0 : index
    %19 = vector.load %arg7[%c0_15, %c0_16] : memref<1x32xf32, #tpu.memory_space<vmem>>, vector<1x32xf32>
    %20 = vector.broadcast %19 : vector<1x32xf32> to vector<16x32xf32>
    %21 = arith.addf %18, %20 : vector<16x32xf32>
    %cst_17 = arith.constant 0.000000e+00 : f32
    %22 = vector.broadcast %cst_17 : f32 to vector<16x32xf32>
    %23 = arith.maximumf %21, %22 : vector<16x32xf32>
    %c0_18 = arith.constant 0 : index
    %c0_19 = arith.constant 0 : index
    %24 = vector.load %arg8[%c0_18, %c0_19] : memref<1x32xf32, #tpu.memory_space<vmem>>, vector<1x32xf32>
    %25 = vector.broadcast %24 : vector<1x32xf32> to vector<16x32xf32>
    %26 = arith.mulf %23, %25 : vector<16x32xf32>
    %cst_20 = arith.constant dense<0.000000e+00> : vector<16xf32>
    %27 = vector.multi_reduction <add>, %26, %cst_20 [1] : vector<16x32xf32> to vector<16xf32>
    %28 = vector.shape_cast %27 : vector<16xf32> to vector<16x1xf32>
    %c0_21 = arith.constant 0 : index
    %c0_22 = arith.constant 0 : index
    %29 = vector.load %arg9[%c0_21, %c0_22] : memref<1x1xf32, #tpu.memory_space<vmem>>, vector<1x1xf32>
    %30 = vector.broadcast %29 : vector<1x1xf32> to vector<16x1xf32>
    %31 = arith.addf %28, %30 : vector<16x1xf32>
    %32 = math.tanh %31 : vector<16x1xf32>
    %c0_23 = arith.constant 0 : index
    %c0_24 = arith.constant 0 : index
    %33 = vector.load %arg10[%c0_23, %c0_24] : memref<16x1xf32, #tpu.memory_space<vmem>>, vector<16x1xf32>
    tpu.vector_store %arg10[%c0_23, %c0_24], %32 {strides = array<i32>} : memref<16x1xf32, #tpu.memory_space<vmem>>, vector<16x1xf32>,
    return
  }
  func.func @transform_0(%arg0: i32) -> (i32, i32) {
    %c0_i32 = arith.constant 0 : i32
    %c0_i32_0 = arith.constant 0 : i32
    return %arg0, %c0_i32 : i32, i32
  }
  func.func @transform_1(%arg0: i32) -> (i32, i32) {
    %c0_i32 = arith.constant 0 : i32
    %c0_i32_0 = arith.constant 0 : i32
    %c0_i32_1 = arith.constant 0 : i32
    return %c0_i32, %c0_i32_0 : i32, i32
  }
  func.func @transform_2(%arg0: i32) -> (i32, i32) {
    %c0_i32 = arith.constant 0 : i32
    %c0_i32_0 = arith.constant 0 : i32
    %c0_i32_1 = arith.constant 0 : i32
    return %c0_i32, %c0_i32_0 : i32, i32
  }
  func.func @transform_3(%arg0: i32) -> (i32, i32) {
    %c0_i32 = arith.constant 0 : i32
    %c0_i32_0 = arith.constant 0 : i32
    %c0_i32_1 = arith.constant 0 : i32
    return %c0_i32, %c0_i32_0 : i32, i32
  }
  func.func @transform_4(%arg0: i32) -> (i32, i32) {
    %c0_i32 = arith.constant 0 : i32
    %c0_i32_0 = arith.constant 0 : i32
    %c0_i32_1 = arith.constant 0 : i32
    return %c0_i32, %c0_i32_0 : i32, i32
  }
  func.func @transform_5(%arg0: i32) -> (i32, i32) {
    %c0_i32 = arith.constant 0 : i32
    %c0_i32_0 = arith.constant 0 : i32
    %c0_i32_1 = arith.constant 0 : i32
    return %c0_i32, %c0_i32_0 : i32, i32
  }
  func.func @transform_6(%arg0: i32) -> (i32, i32) {
    %c0_i32 = arith.constant 0 : i32
    %c0_i32_0 = arith.constant 0 : i32
    %c0_i32_1 = arith.constant 0 : i32
    return %c0_i32, %c0_i32_0 : i32, i32
  }
  func.func @transform_7(%arg0: i32) -> (i32, i32) {
    %c0_i32 = arith.constant 0 : i32
    %c0_i32_0 = arith.constant 0 : i32
    %c0_i32_1 = arith.constant 0 : i32
    return %c0_i32, %c0_i32_0 : i32, i32
  }
  func.func @transform_8(%arg0: i32) -> (i32, i32) {
    %c0_i32 = arith.constant 0 : i32
    %c0_i32_0 = arith.constant 0 : i32
    %c0_i32_1 = arith.constant 0 : i32
    return %c0_i32, %c0_i32_0 : i32, i32
  }
  func.func @transform_9(%arg0: i32) -> (i32, i32) {
    %c0_i32 = arith.constant 0 : i32
    %c0_i32_0 = arith.constant 0 : i32
    return %arg0, %c0_i32 : i32, i32
  }
}

</mosaic_0001>

<bundles_post_ra>
// kernel: tpu_custom_call.1
= control target key start
LH: loop header
LB: loop body
LE: loop exit
PB: predicated region body
PF: predicated region fallthrough
CT: control target
= control target key end

     0   :  { %s902_s11 = smov 0   ;;  %s1001_s0 = inlined_call_operand.vmem [shape: bf16[64,42], index: 0, kind: input, shape index: {}]   ;;  %s1002_s1 = inlined_call_operand.vmem [shape: bf16[42,128], index: 1, kind: input, shape index: {}]   ;;  %s1003_s2 = inlined_call_operand.vmem [shape: f32[1,128], index: 2, kind: input, shape index: {}]   ;;  %s1004_s3 = inlined_call_operand.vmem [shape: bf16[128,64], index: 3, kind: input, shape index: {}]   ;;  %s1005_s4 = inlined_call_operand.vmem [shape: f32[1,64], index: 4, kind: input, shape index: {}]   ;;  %s1006_s5 = inlined_call_operand.vmem [shape: bf16[64,32], index: 5, kind: input, shape index: {}]   ;;  %s1007_s6 = inlined_call_operand.vmem [shape: f32[1,32], index: 6, kind: input, shape index: {}]   ;;  %s1008_s7 = inlined_call_operand.vmem [shape: f32[1,32], index: 7, kind: input, shape index: {}]   ;;  %s1009_s8 = inlined_call_operand.<no memory space> [shape: f32[1,1], index: 8, kind: input, shape index: {}]   ;;  %s1010_s9 = inlined_call_operand.vmem [shape: f32[64,1], index: 9, kind: output, shape index: {}]  }
   0x1   :  { %v14_v0 = vstv %s1009_s8 }
   0x2   :  { %15 = vst [vmem:[#allocation2] sm:$0x1] %v14_v0 }
   0x3 LB: > { %s715_s12 = sadd.s32 4294967295, %s845_s11   ;;  %p719_p0 = scmp.ge.s32.totalorder %s845_s11, 1  ;;  %s845_s11 = sphi %s902_s11, %s21_s11  }
   0x4   : > { %p290_p1 = scmp.lt.s32.totalorder %s845_s11, 5 }
   0x6   : > { %p291_p2 = pnand %p719_p0, %p290_p1 }
   0x7   : > { %v819_v1 = vld [vmem:[%s1002_s1] sm:$0xff] (!%p291_p2)   ;;  %v847_v2 = vmov (!%p291_p2), 0.0   ;;  %v820_v3 = vld [vmem:[%s1002_s1 + $0x8] sm:$0xff] (!%p291_p2)   ;;  %v821_v4 = vld [vmem:[%s1002_s1 + $0x10] sm:$0x1f] (!%p291_p2)   ;;  %s720_s18 = sshll.u32 (!%p291_p2), %s715_s12, 1 }
   0x8   : > { %294 = sbr.rel (%p291_p2) target bundleno = 839 (0x347), region = 56  ;;  %767 = vmatprep.subr.bf16.mxu0 (!%p291_p2), %v847_v2  ;;  %777 = vmatprep.subr.bf16.mxu1 (!%p291_p2), %v847_v2  ;;  %v823_v5 = vld [vmem:[%s1004_s3] sm:$0xff] (!%p291_p2)   ;;  %vm380_vm0 = vcmask (!%p291_p2), 1044480   ;;  %vm848_vm1 = vmmov (!%p291_p2), 0   ;;  %p327_p3 = scmp.lt.s32.totalorder (!%p291_p2), %s720_s18, 7  ;;  %v824_v6 = vld [vmem:[%s1004_s3 + $0x8] sm:$0xff] (!%p291_p2)  }
   0x9   : > { %768 = vmatpush3.bf16.msra.mxu0 (!%p291_p2), %v819_v1  ;;  %773 = vmatprep.mubr.msk.bf16.mxu0 (!%p291_p2), %vm848_vm1, %v847_v2  ;;  %v382_v7 = vsel (!%p291_p2), %vm380_vm0, %v821_v4, 0  ;;  %v825_v8 = vld [vmem:[%s1004_s3 + $0x10] sm:$0xff] (!%p291_p2)   ;;  %vm376_vm2 = vcmask (!%p291_p2), 343040   ;;  %v826_v10 = vld [vmem:[%s1004_s3 + $0x18] sm:$0xff] (!%p291_p2)   ;;  %v827_v11 = vld [vmem:[%s1004_s3 + $0x20] sm:$0xff] (!%p291_p2)   ;;  %vm582_vm3 = vcmask (!%p291_p2), 523264  }
   0xa   : > { %769 = vmatprep.subr.bf16.mxu0 (!%p291_p2), %v847_v2  ;;  %793 = vmatprep.mubr.msk.bf16.mxu1 (!%p291_p2), %vm848_vm1, %v847_v2  ;;  %v828_v12 = vld [vmem:[%s1004_s3 + $0x28] sm:$0xff] (!%p291_p2)   ;;  %v829_v13 = vld [vmem:[%s1004_s3 + $0x30] sm:$0xff] (!%p291_p2)   ;;  %v830_v14 = vld [vmem:[%s1004_s3 + $0x38] sm:$0xff] (!%p291_p2)   ;;  %vm638_vm4 = vcmask (!%p291_p2), 261120   ;;  %vm656_vm5 = vcmask (!%p291_p2), 7168  }
   0xb   : > { %778 = vmatpush3.bf16.msra.mxu1 (!%p291_p2), %v823_v5  ;;  %v831_v15 = vld [vmem:[%s1006_s5] sm:$0xff] (!%p291_p2)   ;;  %v832_v16 = vld [vmem:[%s1006_s5 + $0x8] sm:$0xff] (!%p291_p2)   ;;  %v833_v27 = vld [vmem:[%s1006_s5 + $0x10] sm:$0xff] (!%p291_p2)  }
   0xc   : > { %779 = vmatprep.subr.bf16.mxu1 (!%p291_p2), %v847_v2  ;;  %v724_v17 = vld [vmem:[%s1003_s2] ss:$0 sm:$0xff] (!%p291_p2)  ;;  %v834_v28 = vld [vmem:[%s1006_s5 + $0x18] sm:$0xff] (!%p291_p2)  }
   0xd   : > { %770 = vmatpush3.bf16.msra.mxu0 (!%p291_p2), %v820_v3  ;;  %v730_v29 = vld [vmem:[%s1005_s4] ss:$0 sm:$0xff] (!%p291_p2) }
   0xe   : > { %771 = vmatprep.subr.bf16.mxu0 (!%p291_p2), %v847_v2  ;;  %v739_v39 = vld [vmem:[%s1007_s6] ss:$0 sm:$0xff] (!%p291_p2) }
   0xf   : > { %s1012_s18 = smov (!%p327_p3, %s720_s18), 7  ;;  %780 = vmatpush3.bf16.msra.mxu1 %v824_v6  ;;  %v745_v44 = vld [vmem:[%s1008_s7] ss:$0 sm:$0xff] }
  0x10   : > { %s721_s23 = sshll.u32 %s1012_s18, 2  ;;  %781 = vmatprep.subr.bf16.mxu1 %v847_v2  ;;  %v746_v53 = vld [vmem:[#allocation2] ss:$0 sm:$0xff]  ;;  %s723_s8 = sshll.u32 %s1012_s18, 3 }
  0x11   : > { %s330_s26 = scalar_lea.vmem %s1001_s0, %s721_s23  ;;  %772 = vmatpush3.bf16.msra.mxu0 %v382_v7  ;;  %s336_s17 = scalar_lea.vmem %s1010_s9, %s723_s8 }
  0x12   : > { %v822_v9 = vld [vmem:[%s330_s26] sm:$0xff]   ;;  %797 = vmatprep.subr.bf16.mxu0 %v847_v2 }
  0x13   : > { %782 = vmatpush3.bf16.msra.mxu1 %v825_v8 }
  0x14   : > { %774 = vmatmul.mubr.msk.bf16.vlgmr.msra.gmra.mrb[0].mxu0 %vm376_vm2, %v822_v9  ;;  %783 = vmatprep.subr.bf16.mxu1 %v847_v2 }
  0x15   : > { %805 = vmatprep.mubr.msk.bf16.mxu0 %vm848_vm1, %v847_v2  ;;  %798 = vmatpush3.bf16.msra.mxu0 %v831_v15 }
  0x16   : > { %799 = vmatprep.subr.bf16.mxu0 %v847_v2 }
  0x17   : > { %784 = vmatpush3.bf16.msra.mxu1 %v826_v10 }
  0x18   : > { %785 = vmatprep.subr.bf16.mxu1 %v847_v2 }
  0x19   : > { %800 = vmatpush3.bf16.msra.mxu0 %v832_v16 }
  0x1a   : > { %801 = vmatprep.subr.bf16.mxu0 %v847_v2 }
  0x1b   : > { %786 = vmatpush3.bf16.msra.mxu1 %v827_v11 }
  0x1c   : > { %787 = vmatprep.subr.bf16.mxu1 %v847_v2 }
  0x1d   : > { %802 = vmatpush3.bf16.msra.mxu0 %v833_v27 }
  0x1e   : > { %803 = vmatprep.subr.bf16.mxu0 %v847_v2 }
  0x1f   : > { %788 = vmatpush3.bf16.msra.mxu1 %v828_v12 }
  0x20   : > { %789 = vmatprep.subr.bf16.mxu1 %v847_v2 }
  0x21   : > { %804 = vmatpush3.bf16.msra.mxu0 %v834_v28 }
  0x23   : > { %790 = vmatpush3.bf16.msra.mxu1 %v829_v13 }
  0x24   : > { %791 = vmatprep.subr.bf16.mxu1 %v847_v2 }
  0x27   : > { %792 = vmatpush3.bf16.msra.mxu1 %v830_v14 }
  0xe7   : > { %v418_v18 = vpop.f32.mrb[0].mxu0 }
  0xe8   : > { %v419_v19 = vadd.f32 %v724_v17, %v418_v18  ;;  %v775_v20 = vpop.f32.mrb[1].mxu0 }
  0xe9   : > { %v421_v21 = vpop.f32.mrb[2].mxu0 }
  0xea   : > { %v422_v22 = vadd.f32 %v724_v17, %v421_v21  ;;  %v776_v23 = vpop.f32.mrb[3].mxu0  ;;  %v425_v24 = vmax.f32 %v419_v19, 0.0 }
  0xec   : > { %v426_v25 = vmax.f32 %v422_v22, 0.0 }
  0xee   : > { %v427_v26 = vpack.c.bf16 %v426_v25, %v425_v24 }
  0xf0   : > { %794 = vmatmul.mubr.bf16.vlgmr.msra.gmra.mrb[0].mxu1 %v427_v26 }
 0x1c3   : > { %v533_v30 = vpop.f32.mrb[0].mxu1 }
 0x1c4   : > { %v534_v31 = vadd.f32 %v730_v29, %v533_v30  ;;  %v795_v32 = vpop.f32.mrb[1].mxu1 }
 0x1c5   : > { %v536_v33 = vpop.f32.mrb[2].mxu1 }
 0x1c6   : > { %v537_v34 = vadd.f32 %v730_v29, %v536_v33  ;;  %v796_v35 = vpop.f32.mrb[3].mxu1  ;;  %v540_v36 = vmax.f32 %v534_v31, 0.0 }
 0x1c8   : > { %v541_v37 = vmax.f32 %v537_v34, 0.0 }
 0x1ca   : > { %v542_v38 = vpack.c.bf16 %v541_v37, %v540_v36 }
 0x1cc   : > { %806 = vmatmul.mubr.msk.bf16.vlgmr.msra.gmra.mrb[4].mxu0 %vm582_vm3, %v542_v38 }
 0x29f   : > { %v620_v40 = vpop.f32.mrb[4].mxu0 }
 0x2a0   : > { %v621_v41 = vadd.f32 %v739_v39, %v620_v40  ;;  %v807_v42 = vpop.f32.mrb[5].mxu0 }
 0x2a1   : > { %v623_v43 = vpop.f32.mrb[6].mxu0 }
 0x2a2   : > { %v627_v45 = vmax.f32 %v621_v41, 0.0  ;;  %v624_v46 = vadd.f32 %v739_v39, %v623_v43  ;;  %v808_v47 = vpop.f32.mrb[7].mxu0 }
 0x2a4   : > { %v628_v48 = vmax.f32 %v624_v46, 0.0  ;;  %v636_v49 = vmul.f32 %v745_v44, %v627_v45 }
 0x2a6   : > { %v639_v50 = vsel %vm638_vm4, %v636_v49, 0.0  ;;  %v637_v51 = vmul.f32 %v745_v44, %v628_v48 }
 0x2a7   : > { %640 = vadd.xlane.f32.xlu0 %v639_v50 }
 0x2a8   : > { %v642_v52 = vsel %vm638_vm4, %v637_v51, 0.0 }
 0x2ab   : > { %643 = vadd.xlane.f32.xlu0 %v642_v52 }
 0x334   : > { %v641_v54 = vpop.xlane.xlu0 %640 }
 0x335   : > { %v652_v55 = vadd.f32 %v746_v53, %v641_v54 }
 0x337   : > { %835 = vtanh.f32 %v652_v55 }
 0x338   : > { %v644_v56 = vpop.xlane.xlu0 %643 }
 0x339   : > { %v653_v57 = vadd.f32 %v746_v53, %v644_v56 }
 0x33b   : > { %837 = vtanh.f32 %v653_v57 }
 0x341   : > { %v836_v58 = vpop.eup %835 }
 0x342   : > { %657 = vst.msk [vmem:[%s336_s17] sm:$0xff] %vm656_vm5, %v836_v58 }
 0x345   : > { %v838_v59 = vpop.eup %837 }
 0x346   : > { %658 = vst.msk [vmem:[%s336_s17 + $0x8] sm:$0xff] %vm656_vm5, %v838_v59 }
 0x347 PF: > { %s21_s11 = sadd.s32 1, %s845_s11  }
 0x348   : > { %p18_p4 = scmp.ge.s32.totalorder %s21_s11, 6  }
 0x34a   :  { %20 = sbr.rel (!%p18_p4) target bundleno = 3 (0x3), region = 86 }

</bundles_post_ra>
